<compile_context>
chip_gen: v7x
topology: tpu7x:2x2x1
jax: 0.10.0
libtpu: 0.0.40
codegen_flags: <defaults>
</compile_context>

<pallas_src>
import functools

import jax
import jax.numpy as jnp
from jax.experimental import pallas as pl
from jax.experimental.pallas import tpu as pltpu

N_STATES = 3        # Pendulum-v1 observation dim
HIDDEN = 128
BOUND = 2.0         # Pendulum action bound
POLICY_NOISE = 1e-6
SIGMA_MAX = 1e10


def _actor_kernel(bound, xT_ref, w1T_ref, b1_ref, whT_ref, bh_ref, out_ref):
    xT = xT_ref[...]                      # (n_states, tb)   batch in lanes
    w1T = w1T_ref[...]                    # (HIDDEN, n_states)
    n_states = w1T.shape[1]

    # Hidden layer: tiny-K contraction as VPU broadcast-FMAs, then ReLU.
    # (The second F.relu in the torch code is a no-op.)
    h = w1T[:, 0:1] * xT[0:1, :]                                   # (HIDDEN, tb)
    for j in range(1, n_states):
        h = h + w1T[:, j:j + 1] * xT[j:j + 1, :]
    h = jnp.maximum(h + b1_ref[...], 0.0)                          # + (HIDDEN,1) bias

    # Fused heads on the (otherwise idle) MXU: (2,128) @ (128,tb) -> (2,tb).
    lin = jnp.dot(whT_ref[...], h, preferred_element_type=jnp.float32)

    # Row 0 -> mu, row 1 -> sigma; per-row SMEM scalar biases, per-row EUP work.
    mu_row = bound * jnp.tanh(lin[0:1, :] + bh_ref[0])
    sigma_row = jnp.clip(jnp.logaddexp(lin[1:2, :] + bh_ref[1], 0.0),
                         POLICY_NOISE, SIGMA_MAX)

    out_ref[0:1, :] = mu_row
    out_ref[1:2, :] = sigma_row


def _choose_tile(B, block_b):
    """Batch tile (lane axis). Multiple of 128, or B itself when B <= 128."""
    if B <= 128:
        return B                              # single block; last dim == full dim
    tb = min(block_b, B)
    if B > 256:
        # Keep >= 2 grid steps so the "parallel" axis can shard across v7x's 2 TCs.
        tb = min(tb, pl.cdiv(B, 2))
    return max(128, (tb // 128) * 128)


def actor_forward(x, params, bound=BOUND, block_b=4096):
    """x: [B, n_states] float32. Returns (mu [B,1], sigma [B,1])."""
    w1T, b1, whT, bh = params
    B, n_states = x.shape
    hidden = w1T.shape[0]

    # Batch-in-lanes input. (Ideally produced upstream; this is a ~12 B/row copy.)
    xT = x.T                                                     # (n_states, B)

    tb = _choose_tile(B, block_b)
    grid = (pl.cdiv(B, tb),)                  # partial last block masked by Pallas

    out = pl.pallas_call(
        functools.partial(_actor_kernel, bound),
        out_shape=jax.ShapeDtypeStruct((2, B), jnp.float32),     # lane-dense output
        grid=grid,
        in_specs=[
            pl.BlockSpec((n_states, tb), lambda i: (0, i)),      # xT: batch-tiled
            pl.BlockSpec((hidden, n_states), lambda i: (0, 0)),  # w1T: resident
            pl.BlockSpec((hidden, 1), lambda i: (0, 0)),         # b1: resident
            pl.BlockSpec((2, hidden), lambda i: (0, 0)),         # fused head weights
            pl.BlockSpec(memory_space=pltpu.MemorySpace.SMEM),   # head biases (2,)
        ],
        out_specs=pl.BlockSpec((2, tb), lambda i: (0, i)),       # (mu row | sigma row)
        compiler_params=pltpu.CompilerParams(
            dimension_semantics=("parallel",)),
    )(xT, w1T, b1, whT, bh)

    mu = out[0, :, None]                                         # (B, 1)
    sigma = out[1, :, None]                                      # (B, 1)
    return mu, sigma


def init_params(key, n_states=N_STATES, hidden=HIDDEN):
    """Deterministic init mimicking PyTorch's default U(-1/sqrt(fan_in), 1/sqrt(fan_in)),
    stored directly in the kernel's batch-in-lanes orientation."""
    ks = jax.random.split(key, 6)

    def uniform(k, shape, fan_in):
        bnd = 1.0 / jnp.sqrt(jnp.float32(fan_in))
        return jax.random.uniform(k, shape, jnp.float32, -bnd, bnd)

    w1T = uniform(ks[0], (hidden, n_states), n_states)   # == torch Linear.weight layout
    b1 = uniform(ks[1], (hidden, 1), n_states)
    w_mu = uniform(ks[2], (1, hidden), hidden)
    b_mu = uniform(ks[3], (1,), hidden)
    w_sig = uniform(ks[4], (1, hidden), hidden)
    b_sig = uniform(ks[5], (1,), hidden)
    whT = jnp.concatenate([w_mu, w_sig], axis=0)          # (2, hidden): row0=mu, row1=sigma
    bh = jnp.concatenate([b_mu, b_sig], axis=0)           # (2,)
    return (w1T, b1, whT, bh)


def actor_reference(x, params, bound=BOUND):
    w1T, b1, whT, bh = params
    hp = jax.lax.Precision.HIGHEST
    h = jnp.maximum(jnp.dot(x, w1T.T, precision=hp) + b1[:, 0][None, :], 0.0)
    lin = jnp.dot(h, whT.T, precision=hp) + bh[None, :]
    mu = bound * jnp.tanh(lin[:, 0:1])
    sigma = jnp.clip(jax.nn.softplus(lin[:, 1:2]), POLICY_NOISE, SIGMA_MAX)
    return mu, sigma


if __name__ == "__main__":
    key = jax.random.PRNGKey(0)
    kp, kx = jax.random.split(key)
    params = init_params(kp)

    # Small batch (single grid step, tb == B).
    B = 8
    x = jax.random.normal(kx, (B, N_STATES), dtype=jnp.float32)
    mu, sigma = actor_forward(x, params)
    jax.block_until_ready((mu, sigma))
    mu_ref, sigma_ref = actor_reference(x, params)
    assert mu.shape == (B, 1) and sigma.shape == (B, 1)
    assert jnp.allclose(mu, mu_ref, atol=1e-4, rtol=1e-4)
    assert jnp.allclose(sigma, sigma_ref, atol=1e-4, rtol=1e-4)
    assert bool(jnp.all(sigma >= POLICY_NOISE))

    # Non-multiple batch: multi-step "parallel" grid with a masked partial last
    # block (no wrapper-side padding copy).
    B2 = 200
    x2 = jax.random.normal(jax.random.PRNGKey(1), (B2, N_STATES), dtype=jnp.float32)
    mu2, sigma2 = actor_forward(x2, params)
    jax.block_until_ready((mu2, sigma2))
    mu2_ref, sigma2_ref = actor_reference(x2, params)
    assert mu2.shape == (B2, 1) and sigma2.shape == (B2, 1)
    assert jnp.allclose(mu2, mu2_ref, atol=1e-4, rtol=1e-4)
    assert jnp.allclose(sigma2, sigma2_ref, atol=1e-4, rtol=1e-4)
    assert bool(jnp.all(sigma2 >= POLICY_NOISE))
    assert bool(jnp.all(jnp.isfinite(mu2))) and bool(jnp.all(jnp.isfinite(sigma2)))

    print("KERNEL_OK")
</pallas_src>

<mosaic_0001>
module attributes {stable_mosaic.version = 11 : i64} {
  func.func @_actor_kernel(%arg0: i32, %arg1: memref<3x8xf32, #tpu.memory_space<vmem>>, %arg2: memref<128x3xf32, #tpu.memory_space<vmem>>, %arg3: memref<128x1xf32, #tpu.memory_space<vmem>>, %arg4: memref<2x128xf32, #tpu.memory_space<vmem>>, %arg5: memref<2xf32, #tpu.memory_space<smem>>, %arg6: memref<2x8xf32, #tpu.memory_space<vmem>>) attributes {dimension_semantics = [#tpu.dimension_semantics<parallel>], iteration_bounds = array<i64: 1>, scalar_prefetch = 0 : i64, scratch_operands = 0 : i64, tpu.core_type = #tpu.core_type<tc>, window_params = [{transform_indices = @transform_0, window_bounds = array<i64: 3, 8>}, {pipeline_mode = #tpu.pipeline_mode<synchronous>, transform_indices = @transform_1, window_bounds = array<i64: 128, 3>}, {pipeline_mode = #tpu.pipeline_mode<synchronous>, transform_indices = @transform_2, window_bounds = array<i64: 128, 1>}, {pipeline_mode = #tpu.pipeline_mode<synchronous>, transform_indices = @transform_3, window_bounds = array<i64: 2, 128>}, {transform_indices = @transform_4, window_bounds = array<i64: 2>}, {transform_indices = @transform_5, window_bounds = array<i64: 2, 8>}]} {
    %c0 = arith.constant 0 : index
    %c0_0 = arith.constant 0 : index
    %0 = vector.load %arg1[%c0, %c0_0] : memref<3x8xf32, #tpu.memory_space<vmem>>, vector<3x8xf32>
    %c0_1 = arith.constant 0 : index
    %c0_2 = arith.constant 0 : index
    %1 = vector.load %arg2[%c0_1, %c0_2] : memref<128x3xf32, #tpu.memory_space<vmem>>, vector<128x3xf32>
    %2 = vector.extract_strided_slice %1 {offsets = [0, 0], sizes = [128, 1], strides = [1, 1]} : vector<128x3xf32> to vector<128x1xf32>
    %3 = vector.extract_strided_slice %0 {offsets = [0, 0], sizes = [1, 8], strides = [1, 1]} : vector<3x8xf32> to vector<1x8xf32>
    %4 = vector.broadcast %2 : vector<128x1xf32> to vector<128x8xf32>
    %5 = vector.broadcast %3 : vector<1x8xf32> to vector<128x8xf32>
    %6 = arith.mulf %4, %5 : vector<128x8xf32>
    %7 = vector.extract_strided_slice %1 {offsets = [0, 1], sizes = [128, 1], strides = [1, 1]} : vector<128x3xf32> to vector<128x1xf32>
    %8 = vector.extract_strided_slice %0 {offsets = [1, 0], sizes = [1, 8], strides = [1, 1]} : vector<3x8xf32> to vector<1x8xf32>
    %9 = vector.broadcast %7 : vector<128x1xf32> to vector<128x8xf32>
    %10 = vector.broadcast %8 : vector<1x8xf32> to vector<128x8xf32>
    %11 = arith.mulf %9, %10 : vector<128x8xf32>
    %12 = arith.addf %6, %11 : vector<128x8xf32>
    %13 = vector.extract_strided_slice %1 {offsets = [0, 2], sizes = [128, 1], strides = [1, 1]} : vector<128x3xf32> to vector<128x1xf32>
    %14 = vector.extract_strided_slice %0 {offsets = [2, 0], sizes = [1, 8], strides = [1, 1]} : vector<3x8xf32> to vector<1x8xf32>
    %15 = vector.broadcast %13 : vector<128x1xf32> to vector<128x8xf32>
    %16 = vector.broadcast %14 : vector<1x8xf32> to vector<128x8xf32>
    %17 = arith.mulf %15, %16 : vector<128x8xf32>
    %18 = arith.addf %12, %17 : vector<128x8xf32>
    %c0_3 = arith.constant 0 : index
    %c0_4 = arith.constant 0 : index
    %19 = vector.load %arg3[%c0_3, %c0_4] : memref<128x1xf32, #tpu.memory_space<vmem>>, vector<128x1xf32>
    %20 = vector.broadcast %19 : vector<128x1xf32> to vector<128x8xf32>
    %21 = arith.addf %18, %20 : vector<128x8xf32>
    %cst = arith.constant 0.000000e+00 : f32
    %22 = vector.broadcast %cst : f32 to vector<128x8xf32>
    %23 = arith.maximumf %21, %22 : vector<128x8xf32>
    %c0_5 = arith.constant 0 : index
    %c0_6 = arith.constant 0 : index
    %24 = vector.load %arg4[%c0_5, %c0_6] : memref<2x128xf32, #tpu.memory_space<vmem>>, vector<2x128xf32>
    %cst_7 = arith.constant dense<0.000000e+00> : vector<2x8xf32>
    %25 = tpu.matmul %24, %23, %cst_7 {dimension_numbers = #tpu.dot_dimension_numbers<[1], [0], [0], [1], [0, 0, 1, 1], [], []>} : vector<2x128xf32>, vector<128x8xf32>, vector<2x8xf32> -> vector<2x8xf32>
    %26 = vector.extract_strided_slice %25 {offsets = [0, 0], sizes = [1, 8], strides = [1, 1]} : vector<2x8xf32> to vector<1x8xf32>
    %c0_8 = arith.constant 0 : index
    %27 = memref.load %arg5[%c0_8] : memref<2xf32, #tpu.memory_space<smem>>
    %28 = vector.broadcast %27 : f32 to vector<1x8xf32>
    %29 = arith.addf %26, %28 : vector<1x8xf32>
    %30 = math.tanh %29 : vector<1x8xf32>
    %cst_9 = arith.constant 2.000000e+00 : f32
    %31 = vector.broadcast %cst_9 : f32 to vector<1x8xf32>
    %32 = arith.mulf %31, %30 : vector<1x8xf32>
    %33 = vector.extract_strided_slice %25 {offsets = [1, 0], sizes = [1, 8], strides = [1, 1]} : vector<2x8xf32> to vector<1x8xf32>
    %c1 = arith.constant 1 : index
    %34 = memref.load %arg5[%c1] : memref<2xf32, #tpu.memory_space<smem>>
    %35 = vector.broadcast %34 : f32 to vector<1x8xf32>
    %36 = arith.addf %33, %35 : vector<1x8xf32>
    %cst_10 = arith.constant 0.000000e+00 : f32
    %37 = vector.broadcast %cst_10 : f32 to vector<1x8xf32>
    %38 = arith.maximumf %36, %37 : vector<1x8xf32>
    %39 = vector.broadcast %cst_10 : f32 to vector<1x8xf32>
    %40 = arith.subf %36, %39 : vector<1x8xf32>
    %41 = arith.cmpf one, %40, %40 : vector<1x8xf32>
    %42 = vector.broadcast %cst_10 : f32 to vector<1x8xf32>
    %43 = arith.addf %36, %42 : vector<1x8xf32>
    %44 = math.absf %40 : vector<1x8xf32>
    %cst_11 = arith.constant 0.000000e+00 : f32
    %45 = vector.broadcast %cst_11 : f32 to vector<1x8xf32>
    %46 = arith.subf %45, %44 : vector<1x8xf32>
    %47 = math.exp %46 : vector<1x8xf32>
    %48 = math.log1p %47 : vector<1x8xf32>
    %49 = arith.addf %38, %48 : vector<1x8xf32>
    %50 = arith.select %41, %43, %49 : vector<1x8xi1>, vector<1x8xf32>
    %cst_12 = arith.constant 9.99999997E-7 : f32
    %cst_13 = arith.constant 1.000000e+10 : f32
    %51 = vector.broadcast %cst_12 : f32 to vector<1x8xf32>
    %52 = arith.maximumf %51, %50 : vector<1x8xf32>
    %53 = vector.broadcast %cst_13 : f32 to vector<1x8xf32>
    %54 = arith.minimumf %53, %52 : vector<1x8xf32>
    %c0_14 = arith.constant 0 : index
    %c0_15 = arith.constant 0 : index
    %55 = vector.load %arg6[%c0_14, %c0_15] : memref<2x8xf32, #tpu.memory_space<vmem>>, vector<1x8xf32>
    tpu.vector_store %arg6[%c0_14, %c0_15], %32 {strides = array<i32>} : memref<2x8xf32, #tpu.memory_space<vmem>>, vector<1x8xf32>,
    %c1_16 = arith.constant 1 : index
    %c0_17 = arith.constant 0 : index
    %56 = vector.load %arg6[%c1_16, %c0_17] : memref<2x8xf32, #tpu.memory_space<vmem>>, vector<1x8xf32>
    tpu.vector_store %arg6[%c1_16, %c0_17], %54 {strides = array<i32>} : memref<2x8xf32, #tpu.memory_space<vmem>>, vector<1x8xf32>,
    return
  }
  func.func @transform_0(%arg0: i32) -> (i32, i32) {
    %c0_i32 = arith.constant 0 : i32
    %c0_i32_0 = arith.constant 0 : i32
    return %c0_i32, %arg0 : i32, i32
  }
  func.func @transform_1(%arg0: i32) -> (i32, i32) {
    %c0_i32 = arith.constant 0 : i32
    %c0_i32_0 = arith.constant 0 : i32
    %c0_i32_1 = arith.constant 0 : i32
    return %c0_i32, %c0_i32_0 : i32, i32
  }
  func.func @transform_2(%arg0: i32) -> (i32, i32) {
    %c0_i32 = arith.constant 0 : i32
    %c0_i32_0 = arith.constant 0 : i32
    %c0_i32_1 = arith.constant 0 : i32
    return %c0_i32, %c0_i32_0 : i32, i32
  }
  func.func @transform_3(%arg0: i32) -> (i32, i32) {
    %c0_i32 = arith.constant 0 : i32
    %c0_i32_0 = arith.constant 0 : i32
    %c0_i32_1 = arith.constant 0 : i32
    return %c0_i32, %c0_i32_0 : i32, i32
  }
  func.func @transform_4(%arg0: i32) -> i32 {
    %c0_i32 = arith.constant 0 : i32
    %c0_i32_0 = arith.constant 0 : i32
    return %c0_i32 : i32
  }
  func.func @transform_5(%arg0: i32) -> (i32, i32) {
    %c0_i32 = arith.constant 0 : i32
    %c0_i32_0 = arith.constant 0 : i32
    return %c0_i32, %arg0 : i32, i32
  }
}

</mosaic_0001>

<bundles_post_ra>
// kernel: tpu_custom_call.1
= control target key start
LH: loop header
LB: loop body
LE: loop exit
PB: predicated region body
PF: predicated region fallthrough
CT: control target
= control target key end

     0   :  { %10 = vsyncpa [#allocation4], 0  ;;  %s1041_s0 = inlined_call_operand.vmem [shape: f32[3,8], index: 0, kind: input, shape index: {}]   ;;  %s1042_s1 = inlined_call_operand.vmem [shape: f32[128,3], index: 1, kind: input, shape index: {}]   ;;  %s1043_s2 = inlined_call_operand.vmem [shape: f32[128,1], index: 2, kind: input, shape index: {}]   ;;  %s1044_s3 = inlined_call_operand.vmem [shape: f32[2,128], index: 3, kind: input, shape index: {}]   ;;  %s1045_s4 = inlined_call_operand.vmem [shape: f32[2], index: 4, kind: input, shape index: {}]   ;;  %s1046_s5 = inlined_call_operand.hbm [shape: f32[2,8], index: 5, kind: output, shape index: {}]  }
   0x1   :  { %11 = vsyncpa [#allocation3], 0  ;;  %s26_s20 = sshll.u32 %s1045_s4, 4  ;;  %s27_s20 = int_to_ptr.vmem [resolvable:$true] %s26_s20 }
   0x2   :  { %s715_s21 = scalar_lea.vmem %s27_s20, 16  ;;  %p720_p1 = scmp.lt.s32.totalorder %s27_s20, %s27_s20 }
   0x3   :  { %p716_p0 = scmp.ne.s32.totalorder %s27_s20, %s715_s21  ;;  %p721_p2 = scmp.lt.s32.totalorder %s715_s21, %s715_s21 }
   0x5   :  { %p722_p3 = por %p721_p2, %p720_p1 }
   0x7   :  { %p723_p4 = pnand %p722_p3, %p716_p0 }
   0x9   :  { %726 = shalt.err (!%p723_p4)
}
   0xa   :  { %s753_s22 = smov [#allocation2]  }
   0xb   :  { %29 = dma.vmem_to_smem %s27_s20, 16, %s753_s22, [#allocation4]  }
   0xc   :  { %749 = dma.done.wait [#allocation4], 16  }
   0xd   :  { %750 = vsyncadd [#allocation4], 4294967280 }
   0xe   :  { %33 = sfence }
   0xf   :  { %v35_v0 = vld [vmem:[%s1042_s1] sm:$0xff]  ;;  %v754_v1 = vmov 2   ;;  %v755_v2 = vmov 1   ;;  %v37_v3 = vld [vmem:[%s1042_s1 + $0x10] sm:$0xff]  ;;  %v36_v4 = vld [vmem:[%s1042_s1 + $0x8] sm:$0xff]  ;;  %v756_v7 = vmov 0   ;;  %v131_v44 = vlaneseq }
  0x10   :  { %683 = vset.pattern.permute.xlu0 %v754_v1  ;;  %682 = vset.pattern.permute.xlu1 %v755_v2  ;;  %v40_v5 = vld [vmem:[%s1042_s1 + $0x28] sm:$0xff]  ;;  %v39_v6 = vld [vmem:[%s1042_s1 + $0x20] sm:$0xff]  ;;  %v42_v8 = vld [vmem:[%s1042_s1 + $0x38] sm:$0xff]  ;;  %v757_v19 = vmov 0.0|0.0   ;;  %vm758_vm0 = vmmov 0   ;;  %s550_s10 = sld [smem:[#allocation2]] }
  0x11   :  { %252 = vperm.xlu0 %683, %v35_v0   ;;  %152 = vperm.xlu1 %682, %v35_v0   ;;  %v821_v9 = vld [vmem:[%s1042_s1 + $0x48] sm:$0xff]  ;;  %v38_v10 = vld [vmem:[%s1042_s1 + $0x18] sm:$0xff]  ;;  %v351_v14 = vld [vmem:[%s1043_s2] sm:$0xff]  ;;  %v132_v48 = vshrl.u32 %v131_v44, 7  ;;  %s597_s11 = sld [smem:[#allocation2 + $0x1]]  ;;  %vm578_vm1 = vcmask 57344  }
  0x12   :  { %v830_v11 = vld [vmem:[%s1042_s1 + $0x58] sm:$0xff]  ;;  %v836_v12 = vld [vmem:[%s1042_s1 + $0x68] sm:$0xff]  ;;  %v41_v16 = vld [vmem:[%s1042_s1 + $0x30] sm:$0xff]  ;;  %650 = vmatprep.subr.bf16.mxu0 %v757_v19  ;;  %vm580_vm4 = vcmask 58369  }
  0x13   :  { %v843_v13 = vld [vmem:[%s1042_s1 + $0x78] sm:$0xff]  ;;  %v352_v15 = vld [vmem:[%s1043_s2 + $0x8] sm:$0xff]  ;;  %v353_v17 = vld [vmem:[%s1043_s2 + $0x10] sm:$0xff]  ;;  %v217_v51 = vsub.s32 1, %v132_v48  ;;  %v133_v53 = vsub.s32 0, %v132_v48  ;;  %v317_v57 = vsub.s32 2, %v132_v48 }
  0x14   :  { %v355_v18 = vld [vmem:[%s1043_s2 + $0x20] sm:$0xff]  ;;  %v354_v20 = vld [vmem:[%s1043_s2 + $0x18] sm:$0xff]  ;;  %v357_v21 = vld [vmem:[%s1043_s2 + $0x30] sm:$0xff] }
  0x15   :  { %260 = vperm.xlu0 %683, %v37_v3   ;;  %156 = vperm.xlu1 %682, %v36_v4   ;;  %v359_v22 = vld [vmem:[%s1043_s2 + $0x40] sm:$0xff]  ;;  %v361_v23 = vld [vmem:[%s1043_s2 + $0x50] sm:$0xff]  ;;  %v356_v24 = vld [vmem:[%s1043_s2 + $0x28] sm:$0xff] }
  0x16   :  { %v43_v25 = vld [vmem:[%s1042_s1 + $0x40] sm:$0xff]  ;;  %v366_v27 = vld [vmem:[%s1043_s2 + $0x78] sm:$0xff]  ;;  %v45_v29 = vld [vmem:[%s1042_s1 + $0x50] sm:$0xff] }
  0x17   :  { %v363_v26 = vld [vmem:[%s1043_s2 + $0x60] sm:$0xff]  ;;  %v358_v28 = vld [vmem:[%s1043_s2 + $0x38] sm:$0xff]  ;;  %v360_v30 = vld [vmem:[%s1043_s2 + $0x48] sm:$0xff] }
  0x18   :  { %v47_v33 = vld [vmem:[%s1042_s1 + $0x60] sm:$0xff]  ;;  %v362_v43 = vld [vmem:[%s1043_s2 + $0x58] sm:$0xff]  ;;  %v49_v47 = vld [vmem:[%s1042_s1 + $0x70] sm:$0xff] }
  0x19   :  { %272 = vperm.xlu0 %683, %v40_v5   ;;  %684 = vset.pattern.permute.xlu1 %v754_v1  ;;  %v34_v52 = vld [vmem:[%s1041_s0] sm:$0x7] }
  0x1a   :  { %256 = vperm.xlu1 %684, %v36_v4   ;;  %v948_v56 = vrot.slane %v34_v52, %v217_v51  ;;  %v950_v58 = vrot.slane %v34_v52, %v133_v53  ;;  %v954_v62 = vrot.slane %v34_v52, %v317_v57 }
  0x1d   :  { %691 = vset.pattern.permute.xlu0 %v755_v2 }
  0x1e   :  { %168 = vperm.xlu0 %691, %v39_v6   ;;  %685 = vset.pattern.permute.xlu1 %v756_v7 }
  0x1f   :  { %63 = vperm.xlu1 %685, %v37_v3  }
  0x22   :  { %180 = vperm.xlu0 %691, %v42_v8  }
  0x23   :  { %686 = vset.pattern.permute.xlu1 %v755_v2 }
  0x24   :  { %160 = vperm.xlu1 %686, %v37_v3  }
  0x26   :  { %188 = vperm.xlu0 %691, %v821_v9  }
  0x28   :  { %164 = vperm.xlu1 %686, %v38_v10  }
  0x2a   :  { %196 = vperm.xlu0 %691, %v830_v11  }
  0x2c   :  { %687 = vset.pattern.permute.xlu1 %v754_v1 }
  0x2d   :  { %264 = vperm.xlu1 %687, %v38_v10  }
  0x2e   :  { %204 = vperm.xlu0 %691, %v836_v12  }
  0x31   :  { %688 = vset.pattern.permute.xlu1 %v756_v7 }
  0x32   :  { %212 = vperm.xlu0 %691, %v843_v13   ;;  %369 = vperm.xlu1 %688, %v351_v14  }
  0x36   :  { %706 = vset.pattern.permute.xlu0 %v756_v7  ;;  %73 = vperm.xlu1 %688, %v39_v6  }
  0x37   :  { %53 = vperm.xlu0 %706, %v35_v0  }
  0x3a   :  { %78 = vperm.xlu1 %688, %v40_v5  }
  0x3b   :  { %58 = vperm.xlu0 %706, %v36_v4  }
  0x3e   :  { %689 = vset.pattern.permute.xlu1 %v755_v2 }
  0x3f   :  { %68 = vperm.xlu0 %706, %v38_v10   ;;  %172 = vperm.xlu1 %689, %v40_v5  }
  0x43   :  { %374 = vperm.xlu0 %706, %v352_v15   ;;  %690 = vset.pattern.permute.xlu1 %v754_v1 }
  0x44   :  { %268 = vperm.xlu1 %690, %v39_v6  }
  0x47   :  { %83 = vperm.xlu0 %706, %v41_v16  }
  0x48   :  { %692 = vset.pattern.permute.xlu1 %v756_v7 }
  0x49   :  { %379 = vperm.xlu1 %692, %v353_v17  }
  0x4b   :  { %389 = vperm.xlu0 %706, %v355_v18  }
  0x4d   :  { %384 = vperm.xlu1 %692, %v354_v20  }
  0x4f   :  { %98 = vperm.xlu0 %706, %v821_v9  }
  0x51   :  { %88 = vperm.xlu1 %692, %v42_v8  }
  0x53   :  { %399 = vperm.xlu0 %706, %v357_v21  }
  0x55   :  { %693 = vset.pattern.permute.xlu1 %v755_v2 }
  0x56   :  { %176 = vperm.xlu1 %693, %v41_v16  }
  0x57   :  { %108 = vperm.xlu0 %706, %v830_v11  }
  0x5a   :  { %694 = vset.pattern.permute.xlu1 %v754_v1 }
  0x5b   :  { %276 = vperm.xlu1 %694, %v41_v16   ;;  %409 = vperm.xlu0 %706, %v359_v22  }
  0x5f   :  { %280 = vperm.xlu1 %694, %v42_v8   ;;  %118 = vperm.xlu0 %706, %v836_v12  }
  0x63   :  { %695 = vset.pattern.permute.xlu1 %v756_v7  ;;  %419 = vperm.xlu0 %706, %v361_v23  }
  0x64   :  { %394 = vperm.xlu1 %695, %v356_v24  }
  0x67   :  { %128 = vperm.xlu0 %706, %v843_v13  }
  0x68   :  { %93 = vperm.xlu1 %695, %v43_v25  }
  0x6b   :  { %429 = vperm.xlu0 %706, %v363_v26  }
  0x6c   :  { %696 = vset.pattern.permute.xlu1 %v755_v2 }
  0x6d   :  { %184 = vperm.xlu1 %696, %v43_v25  }
  0x6f   :  { %444 = vperm.xlu0 %706, %v366_v27  }
  0x71   :  { %697 = vset.pattern.permute.xlu1 %v754_v1 }
  0x72   :  { %284 = vperm.xlu1 %697, %v43_v25  }
  0x76   :  { %288 = vperm.xlu1 %697, %v821_v9   ;;  %v364_v9 = vld [vmem:[%s1043_s2 + $0x68] sm:$0xff] }
  0x7a   :  { %698 = vset.pattern.permute.xlu1 %v756_v7 }
  0x7b   :  { %404 = vperm.xlu1 %698, %v358_v28  }
  0x7f   :  { %103 = vperm.xlu1 %698, %v45_v29  }
  0x83   :  { %699 = vset.pattern.permute.xlu1 %v755_v2 }
  0x84   :  { %192 = vperm.xlu1 %699, %v45_v29  }
  0x88   :  { %700 = vset.pattern.permute.xlu1 %v754_v1 }
  0x89   :  { %292 = vperm.xlu1 %700, %v45_v29  }
  0x8d   :  { %296 = vperm.xlu1 %700, %v830_v11  }
  0x90   :  { %v153_v31 = vpop.permute.xlu1 %152  ;;  %v253_v32 = vpop.permute.xlu0 %252 }
  0x91   :  { %701 = vset.pattern.permute.xlu1 %v756_v7  ;;  %v219_v61 = vmul.f32 %v948_v56, %v153_v31  ;;  %v319_v0 = vmul.f32 %v954_v62, %v253_v32 }
  0x92   :  { %414 = vperm.xlu1 %701, %v360_v30  }
  0x94   :  { %v157_v34 = vpop.permute.xlu1 %156  ;;  %v918_v35 = vpop.permute.xlu0 %260 }
  0x95   :  { %v220_v5 = vmul.f32 %v948_v56, %v157_v34  ;;  %v321_v23 = vmul.f32 %v954_v62, %v918_v35  ;;  %v759_v34 = vmov 0.0  }
  0x96   :  { %113 = vperm.xlu1 %701, %v47_v33   ;;  %647 = vmatprep.mubr.msk.f32.mxu0 %vm758_vm0, %v759_v34 }
  0x98   :  { %v920_v36 = vpop.permute.xlu0 %272 }
  0x99   :  { %v257_v37 = vpop.permute.xlu1 %256  ;;  %v324_v57 = vmul.f32 %v954_v62, %v920_v36 }
  0x9a   :  { %702 = vset.pattern.permute.xlu1 %v755_v2 }
  0x9b   :  { %200 = vperm.xlu1 %702, %v47_v33  }
  0x9d   :  { %v923_v38 = vpop.permute.xlu0 %168 }
  0x9e   :  { %v64_v39 = vpop.permute.xlu1 %63  ;;  %v223_v48 = vmul.f32 %v948_v56, %v923_v38 }
  0x9f   :  { %703 = vset.pattern.permute.xlu1 %v754_v1  ;;  %v137_v18 = vmul.f32 %v950_v58, %v64_v39 }
  0xa0   :  { %300 = vperm.xlu1 %703, %v47_v33  }
  0xa1   :  { %v926_v40 = vpop.permute.xlu0 %180 }
  0xa3   :  { %v161_v41 = vpop.permute.xlu1 %160 }
  0xa4   :  { %304 = vperm.xlu1 %703, %v836_v12   ;;  %v320_v12 = vmul.f32 %v954_v62, %v257_v37  ;;  %v221_v14 = vmul.f32 %v948_v56, %v161_v41 }
  0xa5   :  { %v929_v42 = vpop.permute.xlu0 %188 }
  0xa7   :  { %v165_v45 = vpop.permute.xlu1 %164 }
  0xa8   :  { %704 = vset.pattern.permute.xlu1 %v756_v7  ;;  %v222_v24 = vmul.f32 %v948_v56, %v165_v45 }
  0xa9   :  { %424 = vperm.xlu1 %704, %v362_v43   ;;  %v935_v46 = vpop.permute.xlu0 %196 }
  0xac   :  { %v265_v49 = vpop.permute.xlu1 %264 }
  0xad   :  { %123 = vperm.xlu1 %704, %v49_v47   ;;  %v940_v50 = vpop.permute.xlu0 %204  ;;  %v322_v30 = vmul.f32 %v954_v62, %v265_v49 }
  0xb1   :  { %705 = vset.pattern.permute.xlu1 %v755_v2  ;;  %v370_v54 = vpop.permute.xlu1 %369  ;;  %v946_v55 = vpop.permute.xlu0 %212 }
  0xb2   :  { %208 = vperm.xlu1 %705, %v49_v47  }
  0xb5   :  { %v74_v59 = vpop.permute.xlu1 %73 }
  0xb6   :  { %v54_v60 = vpop.permute.xlu0 %53  ;;  %707 = vset.pattern.permute.xlu1 %v754_v1  ;;  %v139_v49 = vmul.f32 %v950_v58, %v74_v59 }
  0xb7   :  { %v135_v63 = vmul.f32 %v950_v58, %v54_v60  ;;  %308 = vperm.xlu1 %707, %v49_v47  }
  0xb8   :  { %v239_v60 = vadd.f32 %v223_v48, %v139_v49 }
  0xb9   :  { %v235_v2 = vadd.f32 %v219_v61, %v135_v63  ;;  %v79_v3 = vpop.permute.xlu1 %78 }
  0xba   :  { %v59_v4 = vpop.permute.xlu0 %58  ;;  %v140_v53 = vmul.f32 %v950_v58, %v79_v3 }
  0xbb   :  { %v136_v6 = vmul.f32 %v950_v58, %v59_v4  ;;  %312 = vperm.xlu1 %707, %v843_v13   ;;  %v335_v8 = vadd.f32 %v319_v0, %v235_v2  ;;  %v365_v13 = vld [vmem:[%s1043_s2 + $0x70] sm:$0xff] }
  0xbd   :  { %v236_v1 = vadd.f32 %v220_v5, %v136_v6  ;;  %v447_v16 = vadd.f32 %v370_v54, %v335_v8 }
  0xbe   :  { %v69_v10 = vpop.permute.xlu0 %68  ;;  %v173_v11 = vpop.permute.xlu1 %172 }
  0xbf   :  { %708 = vset.pattern.permute.xlu1 %v756_v7  ;;  %v336_v15 = vadd.f32 %v320_v12, %v236_v1  ;;  %v138_v20 = vmul.f32 %v950_v58, %v69_v10  ;;  %v237_v7 = vadd.f32 %v221_v14, %v137_v18  ;;  %v463_v26 = vmax.f32 %v447_v16, 0.0 }
  0xc0   :  { %434 = vperm.xlu1 %708, %v364_v9   ;;  %v224_v51 = vmul.f32 %v948_v56, %v173_v11 }
  0xc1   :  { %v238_v27 = vadd.f32 %v222_v24, %v138_v20  ;;  %v337_v31 = vadd.f32 %v321_v23, %v237_v7 }
  0xc2   :  { %v375_v17 = vpop.permute.xlu0 %374  ;;  %v240_v61 = vadd.f32 %v224_v51, %v140_v53 }
  0xc3   :  { %v448_v21 = vadd.f32 %v375_v17, %v336_v15  ;;  %v269_v22 = vpop.permute.xlu1 %268  ;;  %v338_v33 = vadd.f32 %v322_v30, %v238_v27  ;;  %v226_v15 = vmul.f32 %v948_v56, %v926_v40 }
  0xc4   :  { %439 = vperm.xlu1 %708, %v365_v13   ;;  %v323_v54 = vmul.f32 %v954_v62, %v269_v22  ;;  %v340_v5 = vadd.f32 %v324_v57, %v240_v61 }
  0xc5   :  { %v464_v25 = vmax.f32 %v448_v21, 0.0 }
  0xc6   :  { %v84_v47 = vpop.permute.xlu0 %83  ;;  %v339_v2 = vadd.f32 %v323_v54, %v239_v60 }
  0xc7   :  { %v651_v28 = vpack.c.bf16 %v464_v25, %v463_v26  ;;  %v141_v10 = vmul.f32 %v950_v58, %v84_v47 }
  0xc8   :  { %v380_v29 = vpop.permute.xlu1 %379 }
  0xc9   :  { %652 = vmatpush3.bf16.msra.mxu0 %v651_v28  ;;  %v449_v32 = vadd.f32 %v380_v29, %v337_v31  ;;  %v228_v31 = vmul.f32 %v948_v56, %v929_v42 }
  0xca   :  { %653 = vmatprep.subr.bf16.mxu0 %v757_v19  ;;  %v390_v0 = vpop.permute.xlu0 %389 }
  0xcb   :  { %v465_v39 = vmax.f32 %v449_v32, 0.0  ;;  %v451_v4 = vadd.f32 %v390_v0, %v339_v2 }
  0xcc   :  { %v385_v35 = vpop.permute.xlu1 %384 }
  0xcd   :  { %v450_v37 = vadd.f32 %v385_v35, %v338_v33  ;;  %v467_v59 = vmax.f32 %v451_v4, 0.0 }
  0xce   :  { %v99_v11 = vpop.permute.xlu0 %98 }
  0xcf   :  { %v466_v41 = vmax.f32 %v450_v37, 0.0  ;;  %v144_v32 = vmul.f32 %v950_v58, %v99_v11 }
  0xd0   :  { %v89_v43 = vpop.permute.xlu1 %88 }
  0xd1   :  { %v654_v44 = vpack.c.bf16 %v466_v41, %v465_v39  ;;  %v142_v13 = vmul.f32 %v950_v58, %v89_v43  ;;  %v244_v41 = vadd.f32 %v228_v31, %v144_v32 }
  0xd2   :  { %v400_v21 = vpop.permute.xlu0 %399 }
  0xd3   :  { %655 = vmatpush3.bf16.msra.mxu0 %v654_v44  ;;  %v242_v22 = vadd.f32 %v226_v15, %v142_v13 }
  0xd4   :  { %656 = vmatprep.subr.bf16.mxu0 %v757_v19 }
  0xd5   :  { %v177_v45 = vpop.permute.xlu1 %176 }
  0xd6   :  { %v225_v36 = vmul.f32 %v948_v56, %v177_v45  ;;  %v109_v37 = vpop.permute.xlu0 %108 }
  0xd8   :  { %v241_v16 = vadd.f32 %v225_v36, %v141_v10 }
  0xda   :  { %v277_v52 = vpop.permute.xlu1 %276  ;;  %v410_v47 = vpop.permute.xlu0 %409 }
  0xdb   :  { %v325_v12 = vmul.f32 %v954_v62, %v277_v52 }
  0xdd   :  { %v341_v17 = vadd.f32 %v325_v12, %v241_v16 }
  0xde   :  { %v281_v63 = vpop.permute.xlu1 %280  ;;  %v119_v4 = vpop.permute.xlu0 %118 }
  0xdf   :  { %v326_v18 = vmul.f32 %v954_v62, %v281_v63  ;;  %v453_v23 = vadd.f32 %v400_v21, %v341_v17 }
  0xe1   :  { %v342_v7 = vadd.f32 %v326_v18, %v242_v22  ;;  %v469_v26 = vmax.f32 %v453_v23, 0.0 }
  0xe3   :  { %v395_v38 = vpop.permute.xlu1 %394 }
  0xe4   :  { %v452_v6 = vadd.f32 %v395_v38, %v340_v5  ;;  %v230_v5 = vmul.f32 %v948_v56, %v935_v46  ;;  %v146_v38 = vmul.f32 %v950_v58, %v109_v37 }
  0xe6   :  { %v468_v8 = vmax.f32 %v452_v6, 0.0 }
  0xe7   :  { %v94_v1 = vpop.permute.xlu1 %93 }
  0xe8   :  { %v657_v9 = vpack.c.bf16 %v468_v8, %v467_v59  ;;  %v143_v33 = vmul.f32 %v950_v58, %v94_v1 }
  0xea   :  { %658 = vmatpush3.bf16.msra.mxu0 %v657_v9  ;;  %v246_v9 = vadd.f32 %v230_v5, %v146_v38 }
  0xeb   :  { %659 = vmatprep.subr.bf16.mxu0 %v757_v19 }
  0xec   :  { %v185_v3 = vpop.permute.xlu1 %184 }
  0xed   :  { %v227_v30 = vmul.f32 %v948_v56, %v185_v3  ;;  %v420_v3 = vpop.permute.xlu0 %419 }
  0xef   :  { %v243_v39 = vadd.f32 %v227_v30, %v143_v33 }
  0xf1   :  { %v285_v14 = vpop.permute.xlu1 %284  ;;  %v129_v18 = vpop.permute.xlu0 %128 }
  0xf2   :  { %v327_v34 = vmul.f32 %v954_v62, %v285_v14 }
  0xf4   :  { %v343_v43 = vadd.f32 %v327_v34, %v243_v39 }
  0xf5   :  { %v289_v20 = vpop.permute.xlu1 %288 }
  0xf6   :  { %v328_v44 = vmul.f32 %v954_v62, %v289_v20  ;;  %v455_v48 = vadd.f32 %v410_v47, %v343_v43 }
  0xf8   :  { %v344_v49 = vadd.f32 %v328_v44, %v244_v41  ;;  %v471_v42 = vmax.f32 %v455_v48, 0.0 }
  0xfa   :  { %v405_v24 = vpop.permute.xlu1 %404 }
  0xfb   :  { %v454_v25 = vadd.f32 %v405_v24, %v342_v7  ;;  %v232_v7 = vmul.f32 %v948_v56, %v940_v50  ;;  %v234_v24 = vmul.f32 %v948_v56, %v946_v55 }
  0xfd   :  { %v470_v27 = vmax.f32 %v454_v25, 0.0  ;;  %v148_v25 = vmul.f32 %v950_v58, %v119_v4 }
  0xfe   :  { %v104_v28 = vpop.permute.xlu1 %103 }
  0xff   :  { %v660_v29 = vpack.c.bf16 %v470_v27, %v469_v26  ;;  %v145_v63 = vmul.f32 %v950_v58, %v104_v28  ;;  %v150_v26 = vmul.f32 %v950_v58, %v129_v18  ;;  %v248_v31 = vadd.f32 %v232_v7, %v148_v25 }
 0x101   :  { %661 = vmatpush3.bf16.msra.mxu0 %v660_v29  ;;  %v250_v32 = vadd.f32 %v234_v24, %v150_v26 }
 0x102   :  { %662 = vmatprep.subr.bf16.mxu0 %v757_v19 }
 0x103   :  { %v193_v40 = vpop.permute.xlu1 %192 }
 0x104   :  { %v229_v61 = vmul.f32 %v948_v56, %v193_v40  ;;  %v430_v40 = vpop.permute.xlu0 %429 }
 0x106   :  { %v245_v6 = vadd.f32 %v229_v61, %v145_v63 }
 0x108   :  { %v293_v35 = vpop.permute.xlu1 %292  ;;  %v445_v44 = vpop.permute.xlu0 %444 }
 0x109   :  { %v329_v0 = vmul.f32 %v954_v62, %v293_v35 }
 0x10b   :  { %v345_v59 = vadd.f32 %v329_v0, %v245_v6 }
 0x10c   :  { %v297_v45 = vpop.permute.xlu1 %296 }
 0x10d   :  { %v330_v8 = vmul.f32 %v954_v62, %v297_v45  ;;  %v457_v10 = vadd.f32 %v420_v3, %v345_v59 }
 0x10f   :  { %v346_v36 = vadd.f32 %v330_v8, %v246_v9  ;;  %v473_v14 = vmax.f32 %v457_v10, 0.0 }
 0x111   :  { %v415_v51 = vpop.permute.xlu1 %414 }
 0x112   :  { %v456_v52 = vadd.f32 %v415_v51, %v344_v49 }
 0x114   :  { %v472_v53 = vmax.f32 %v456_v52, 0.0 }
 0x115   :  { %v114_v54 = vpop.permute.xlu1 %113 }
 0x116   :  { %v663_v57 = vpack.c.bf16 %v472_v53, %v471_v42  ;;  %v147_v20 = vmul.f32 %v950_v58, %v114_v54  ;;  %v551_v54 = vstv %s550_s10 }
 0x118   :  { %664 = vmatpush3.bf16.msra.mxu0 %v663_v57  ;;  %v556_v57 = vstv %s597_s11 }
 0x119   :  { %665 = vmatprep.subr.bf16.mxu0 %v757_v19 }
 0x11a   :  { %v201_v60 = vpop.permute.xlu1 %200 }
 0x11b   :  { %v231_v17 = vmul.f32 %v948_v56, %v201_v60 }
 0x11d   :  { %v247_v23 = vadd.f32 %v231_v17, %v147_v20 }
 0x11f   :  { %v301_v2 = vpop.permute.xlu1 %300 }
 0x120   :  { %v331_v21 = vmul.f32 %v954_v62, %v301_v2 }
 0x122   :  { %v347_v27 = vadd.f32 %v331_v21, %v247_v23 }
 0x123   :  { %v305_v1 = vpop.permute.xlu1 %304 }
 0x124   :  { %v332_v28 = vmul.f32 %v954_v62, %v305_v1  ;;  %v459_v34 = vadd.f32 %v430_v40, %v347_v27 }
 0x126   :  { %v348_v37 = vadd.f32 %v332_v28, %v248_v31  ;;  %v475_v47 = vmax.f32 %v459_v34, 0.0 }
 0x128   :  { %v425_v11 = vpop.permute.xlu1 %424 }
 0x129   :  { %v458_v12 = vadd.f32 %v425_v11, %v346_v36 }
 0x12b   :  { %v474_v15 = vmax.f32 %v458_v12, 0.0 }
 0x12c   :  { %v124_v13 = vpop.permute.xlu1 %123 }
 0x12d   :  { %v666_v16 = vpack.c.bf16 %v474_v15, %v473_v14  ;;  %v149_v50 = vmul.f32 %v950_v58, %v124_v13 }
 0x12f   :  { %667 = vmatpush3.bf16.msra.mxu0 %v666_v16 }
 0x130   :  { %668 = vmatprep.subr.bf16.mxu0 %v757_v19 }
 0x131   :  { %v209_v46 = vpop.permute.xlu1 %208 }
 0x132   :  { %v233_v33 = vmul.f32 %v948_v56, %v209_v46 }
 0x134   :  { %v249_v41 = vadd.f32 %v233_v33, %v149_v50 }
 0x136   :  { %v309_v22 = vpop.permute.xlu1 %308 }
 0x137   :  { %v333_v55 = vmul.f32 %v954_v62, %v309_v22 }
 0x139   :  { %v349_v49 = vadd.f32 %v333_v55, %v249_v41 }
 0x13a   :  { %v313_v29 = vpop.permute.xlu1 %312 }
 0x13b   :  { %v334_v30 = vmul.f32 %v954_v62, %v313_v29  ;;  %v479_v62 = vld [vmem:[%s1044_s3] sm:$0x3]  ;;  %s760_s3 = smov [#allocation5]  }
 0x13c   :  { %s588_s12 = sshll.u32 %s760_s3, 4  ;;  %s589_s12 = int_to_ptr.vmem [resolvable:$true] %s588_s12 }
 0x13d   :  { %v350_v35 = vadd.f32 %v334_v30, %v250_v32  ;;  %s727_s13 = scalar_lea.vmem %s589_s12, 32  ;;  %p732_p6 = scmp.lt.s32.totalorder %s589_s12, %s589_s12 }
 0x13e   :  { %p728_p5 = scmp.ne.s32.totalorder %s589_s12, %s727_s13  ;;  %p733_p7 = scmp.lt.s32.totalorder %s727_s13, %s727_s13 }
 0x13f   :  { %v435_v39 = vpop.permute.xlu1 %434  ;;  %v462_v45 = vadd.f32 %v445_v44, %v350_v35 }
 0x140   :  { %v460_v43 = vadd.f32 %v435_v39, %v348_v37  ;;  %p734_p8 = por %p733_p7, %p732_p6 }
 0x141   :  { %v478_v56 = vmax.f32 %v462_v45, 0.0 }
 0x142   :  { %v476_v48 = vmax.f32 %v460_v43, 0.0  ;;  %p735_p9 = pnand %p734_p8, %p728_p5 }
 0x143   :  { %v440_v51 = vpop.permute.xlu1 %439 }
 0x144   :  { %v669_v52 = vpack.c.bf16 %v476_v48, %v475_v47  ;;  %v461_v42 = vadd.f32 %v440_v51, %v349_v49 }
 0x146   :  { %v477_v53 = vmax.f32 %v461_v42, 0.0  ;;  %670 = vmatpush3.bf16.msra.mxu0 %v669_v52 }
 0x147   :  { %671 = vmatprep.subr.bf16.mxu0 %v757_v19 }
 0x148   :  { %v672_v58 = vpack.c.bf16 %v478_v56, %v477_v53 }
 0x14a   :  { %673 = vmatpush3.bf16.msra.mxu0 %v672_v58 }
 0x14d   :  { %648 = vmatmul.mubr.f32.vlgmr.msra.gmra.mrb[0].mxu0 %v479_v62 }
 0x220   :  { %v546_v60 = vpop.f32.mrb[0].mxu0 }
 0x221   :  { %v552_v61 = vadd.f32 %v551_v54, %v546_v60  ;;  %v557_v63 = vadd.f32 %v556_v57, %v546_v60  ;;  %v649_v0 = vpop.f32.mrb[1].mxu0 }
 0x223   :  { %709 = vtanh.f32 %v552_v61  ;;  %v561_v2 = vand.u32 2147483647, %v557_v63  ;;  %v558_v11 = vmax.f32 %v557_v63, 0.0  ;;  %vm559_vm3 = vcmp.ne.f32.partialorder %v557_v63, %v557_v63 }
 0x225   :  { %v562_v4 = vsub.f32 0.0, %v561_v2 }
 0x227   :  { %v563_v5 = vmul.f32 1.442695, %v562_v4 }
 0x229   :  { %711 = vpow2.f32 %v563_v5 }
 0x22d   :  { %v710_v19 = vpop.eup %709 }
 0x22e   :  { %v554_v38 = vmul.f32 2.0, %v710_v19 }
 0x230   :  { %579 = vst.msk [vmem:[#allocation5] sm:$0x1] %vm578_vm1, %v554_v38 }
 0x233   :  { %v712_v6 = vpop.eup %711 }
 0x234   :  { %v565_v59 = vadd.f32 1.0, %v712_v6  ;;  %v568_v8 = vmul.f32 -0.5, %v712_v6  ;;  %v571_v9 = vand.u32 2147483647, %v712_v6 }
 0x236   :  { %713 = vlog2.f32 %v565_v59  ;;  %v569_v1 = vadd.f32 1.0, %v568_v8  ;;  %vm572_vm2 = vcmp.lt.f32.partialorder %v571_v9, 0.0004427343 }
 0x238   :  { %v570_v36 = vmul.f32 %v712_v6, %v569_v1 }
 0x240   :  { %v714_v3 = vpop.eup %713 }
 0x241   :  { %v567_v10 = vmul.f32 0.6931472, %v714_v3 }
 0x243   :  { %v573_v12 = vsel %vm572_vm2, %v570_v36, %v567_v10 }
 0x244   :  { %v574_v14 = vadd.f32 %v573_v12, %v558_v11 }
 0x246   :  { %v575_v15 = vsel %vm559_vm3, %v557_v63, %v574_v14 }
 0x247   :  { %v576_v13 = vmax.f32 %v575_v15, 1e-06 }
 0x249   :  { %v577_v16 = vmin.f32 %v576_v13, 1e+10 }
 0x24b   :  { %581 = vst.msk [vmem:[#allocation5] sm:$0x2] %vm580_vm4, %v577_v16 }
 0x24c   :  { %738 = shalt.err (!%p735_p9)
}
 0x24d   :  { %s739_s16 = scalar_lea.hbm %s1046_s5, 32 }
 0x24e   :  { %p740_p10 = scmp.ne.s32.totalorder %s1046_s5, %s739_s16  ;;  %p743_p11 = scmp.lt.u32.totalorder %s739_s16, %s1046_s5 }
 0x250   :  { %p745_p12 = pnand %p743_p11, %p740_p10 }
 0x252   :  { %748 = shalt.err (!%p745_p12)
}
 0x253   :  { %591 = dma.vmem_to_hbm [thread:$0]  %s589_s12, 32, %s1046_s5, [#allocation3]  }
 0x254   :  { %751 = dma.done.wait [#allocation3], 32  }
 0x255   :  { %752 = vsyncadd [#allocation3], 4294967264 }
 0x256   :  { %595 = vsyncpa [#allocation3], 1 }
 0x257   :  { %596 = vsyncpa [#allocation4], 1 }

</bundles_post_ra>
